<compile_context>
chip_gen: v6e
topology: v6e:2x2x1
jax: 0.10.0
libtpu: 0.0.40
codegen_flags: <defaults>
</compile_context>

<pallas_src>
import functools

import jax
import jax.numpy as jnp
from jax.experimental import pallas as pl
from jax.experimental.pallas import tpu as pltpu

LANE = 128
SUBLANE = 8


def _round_up(x, m):
    return ((x + m - 1) // m) * m


def _pick_tile_rows(hw, max_rows=2048):
    """Largest row-tile <= max_rows dividing H*W (prefer multiples of 256)."""
    if hw <= max_rows:
        return hw
    for step in (256, SUBLANE):
        t = max_rows - (max_rows % step)
        while t >= step:
            if hw % t == 0:
                return t
            t -= step
    return hw  # fallback: one tile per image


# ----------------------------- Pallas kernel ------------------------------- #

def conv_pool_head_kernel(patch_ref, w_ref, cb_ref, hw_ref, hb_ref,
                          logits_ref, pool_acc, *, inv_hw):
    """Fused im2col-conv + bias + ReLU + global-avg-pool + linear head.

    Grid: (image n [parallel], row-tile r [arbitrary reduction]).

    patch_ref:  (tile_rows, KP)  bf16 im2col patches (lane-dense contraction)
    w_ref:      (KP, CP)         bf16 conv weight (9*Cin rows, Cout -> 128 cols)
    cb_ref:     (1, CP)          f32 conv bias (zero padded)
    hw_ref:     (CP, KC)         f32 head weight (classes zero-padded to 128)
    hb_ref:     (1, KC)          f32 head bias (zero padded)
    logits_ref: (1, KC)          f32 per-image logits (written at last tile)
    pool_acc:   (1, CP)          f32 scratch accumulator for the GAP
    """
    r = pl.program_id(1)

    @pl.when(r == 0)
    def _init():
        pool_acc[...] = jnp.zeros_like(pool_acc)

    # Single lane-dense matmul per grid step; MXU accumulates internally.
    y = jnp.dot(patch_ref[...], w_ref[...],
                preferred_element_type=jnp.float32)            # (rows, CP)
    y = jnp.maximum(y + cb_ref[...], 0.0)                      # bias+ReLU, f32
    pool_acc[...] += jnp.sum(y, axis=0, keepdims=True)         # (1, CP)

    @pl.when(r == pl.num_programs(1) - 1)
    def _finalize():
        pooled = pool_acc[...] * inv_hw                        # (1, CP)
        logits_ref[...] = (
            jnp.dot(pooled, hw_ref[...],
                    preferred_element_type=jnp.float32) + hb_ref[...])


# ------------------------------- wrapper ----------------------------------- #

def init_params(key, in_chans=3, hidden=32, num_classes=8):
    k1, k2, k3, k4 = jax.random.split(key, 4)
    conv_w = jax.random.normal(k1, (hidden, in_chans, 3, 3), jnp.float32) * 0.1
    conv_b = jax.random.normal(k2, (hidden,), jnp.float32) * 0.01
    head_w = jax.random.normal(k3, (hidden, num_classes), jnp.float32) * 0.1
    head_b = jax.random.normal(k4, (num_classes,), jnp.float32) * 0.01
    return dict(conv_w=conv_w, conv_b=conv_b, head_w=head_w, head_b=head_b)


@functools.partial(jax.jit, static_argnames=("has_targets",))
def sorghum_forward(image, targets, params, has_targets=True):
    """image: (N, 3, H, W) float32 (NCHW, as in PyTorch); targets: (N,) int."""
    conv_w, conv_b = params["conv_w"], params["conv_b"]
    head_w, head_b = params["head_w"], params["head_b"]

    N, Cin, H, W = image.shape
    Cout = conv_w.shape[0]
    K = head_w.shape[1]
    HW = H * W
    KTAPS = 9 * Cin
    CP = _round_up(Cout, LANE)        # conv output channels, lane-dense
    KP = _round_up(KTAPS, SUBLANE)    # im2col contraction dim (27 -> 32)
    KC = _round_up(K, LANE)           # padded logits width (lane-dense store)

    tile_rows = _pick_tile_rows(HW)
    n_r = HW // tile_rows

    # ---- wrapper-side im2col: (N, H*W, 9*Cin) lane-dense bf16 patches ------
    x = jnp.transpose(image, (0, 2, 3, 1))                    # NHWC
    xp = jnp.pad(x, ((0, 0), (1, 1), (1, 1), (0, 0)))
    patches = jnp.concatenate(
        [xp[:, ky:ky + H, kx:kx + W, :]
         for ky in range(3) for kx in range(3)],
        axis=-1).reshape(N, HW, KTAPS)
    patches = jnp.pad(patches, ((0, 0), (0, 0), (0, KP - KTAPS)))
    patches = patches.astype(jnp.bfloat16)

    # PyTorch conv weight (Cout, Cin, kh, kw) -> (kh*kw*Cin, Cout), padded so
    # rows match the [ky, kx, cin] patch layout.  Zero weight cols + zero bias
    # + ReLU(0)=0 + zero head rows keep the channel padding exact.
    wmat = jnp.transpose(conv_w, (2, 3, 1, 0)).reshape(KTAPS, Cout)
    wmat = jnp.pad(wmat, ((0, KP - KTAPS), (0, CP - Cout))).astype(jnp.bfloat16)
    cb = jnp.pad(conv_b, (0, CP - Cout)).reshape(1, CP).astype(jnp.float32)

    hw_p = jnp.pad(head_w, ((0, CP - Cout), (0, KC - K))).astype(jnp.float32)
    hb_p = jnp.pad(head_b, (0, KC - K)).reshape(1, KC).astype(jnp.float32)

    kernel = functools.partial(conv_pool_head_kernel, inv_hw=1.0 / float(HW))

    logits_p = pl.pallas_call(
        kernel,
        out_shape=jax.ShapeDtypeStruct((N, 1, KC), jnp.float32),
        grid=(N, n_r),
        in_specs=[
            pl.BlockSpec((None, tile_rows, KP), lambda n, r: (n, r, 0)),
            pl.BlockSpec((KP, CP), lambda n, r: (0, 0)),
            pl.BlockSpec((1, CP), lambda n, r: (0, 0)),
            pl.BlockSpec((CP, KC), lambda n, r: (0, 0)),
            pl.BlockSpec((1, KC), lambda n, r: (0, 0)),
        ],
        out_specs=pl.BlockSpec((None, 1, KC), lambda n, r: (n, 0, 0)),
        scratch_shapes=[pltpu.VMEM((1, CP), jnp.float32)],
        compiler_params=pltpu.CompilerParams(
            dimension_semantics=("parallel", "arbitrary"),
            vmem_limit_bytes=32 * 1024 * 1024),
    )(patches, wmat, cb, hw_p, hb_p)

    logits = logits_p.reshape(N, KC)[:, :K]

    if has_targets:
        t = targets.astype(jnp.int32)
        logp = jax.nn.log_softmax(logits, axis=-1)
        nll = -jnp.take_along_axis(logp, t[:, None], axis=1)[:, 0]
        loss = jnp.mean(nll)                                   # CE, mean reduce
        acc = jnp.mean((jnp.argmax(logits, axis=1) == t).astype(jnp.float32))
        return logits, loss, {"accuracy": acc}
    # matches `return x, 0, {}` in the PyTorch module
    return logits, jnp.float32(0.0), {}


def reference_logits(image, params):
    """Plain-JAX f32 reference of the same synthetic backbone (for tolerance)."""
    conv_w, conv_b = params["conv_w"], params["conv_b"]
    head_w, head_b = params["head_w"], params["head_b"]
    N, Cin, H, W = image.shape
    x = jnp.transpose(image, (0, 2, 3, 1))
    xp = jnp.pad(x, ((0, 0), (1, 1), (1, 1), (0, 0)))
    patches = jnp.concatenate(
        [xp[:, ky:ky + H, kx:kx + W, :]
         for ky in range(3) for kx in range(3)],
        axis=-1).reshape(N, H * W, 9 * Cin)
    wmat = jnp.transpose(conv_w, (2, 3, 1, 0)).reshape(9 * Cin, -1)
    feat = jnp.maximum(patches @ wmat + conv_b, 0.0)
    pooled = feat.mean(axis=1)
    return pooled @ head_w + head_b


# --------------------------------- main ------------------------------------ #

if __name__ == "__main__":
    key = jax.random.PRNGKey(0)
    k_img, k_tgt, k_param = jax.random.split(key, 3)

    N, Cin, H, W = 2, 3, 16, 16
    num_classes = 8
    hidden = 32

    image = jax.random.normal(k_img, (N, Cin, H, W), jnp.float32)
    targets = jax.random.randint(k_tgt, (N,), 0, num_classes, jnp.int32)
    params = init_params(k_param, in_chans=Cin, hidden=hidden,
                         num_classes=num_classes)

    logits, loss, metrics_dict = sorghum_forward(image, targets, params,
                                                 has_targets=True)
    jax.block_until_ready((logits, loss, metrics_dict))

    # no-targets path (loss must be exactly 0, empty metrics)
    logits2, loss2, _ = sorghum_forward(image, targets, params,
                                        has_targets=False)
    jax.block_until_ready((logits2, loss2))

    # bf16 conv operands with f32 accumulation -> tolerance check vs f32 ref.
    ref = reference_logits(image, params)
    max_err = float(jnp.max(jnp.abs(logits - ref)))

    assert logits.shape == (N, num_classes)
    assert bool(jnp.isfinite(loss))
    assert float(loss2) == 0.0
    assert max_err < 5e-2, f"logits mismatch vs reference: {max_err}"
    print("KERNEL_OK")
</pallas_src>

<mosaic_0001>
module attributes {stable_mosaic.version = 11 : i64} {
  func.func @conv_pool_head_kernel(%arg0: i32, %arg1: i32, %arg2: memref<1x256x32xbf16, #tpu.memory_space<vmem>>, %arg3: memref<32x128xbf16, #tpu.memory_space<vmem>>, %arg4: memref<1x128xf32, #tpu.memory_space<vmem>>, %arg5: memref<128x128xf32, #tpu.memory_space<vmem>>, %arg6: memref<1x128xf32, #tpu.memory_space<vmem>>, %arg7: memref<1x1x128xf32, #tpu.memory_space<vmem>>, %arg8: memref<1x128xf32, #tpu.memory_space<vmem>>) attributes {dimension_semantics = [#tpu.dimension_semantics<parallel>, #tpu.dimension_semantics<arbitrary>], iteration_bounds = array<i64: 2, 1>, scalar_prefetch = 0 : i64, scratch_operands = 1 : i64, tpu.core_type = #tpu.core_type<tc>, window_params = [{transform_indices = @transform_0, window_bounds = array<i64: 1, 256, 32>}, {pipeline_mode = #tpu.pipeline_mode<synchronous>, transform_indices = @transform_1, window_bounds = array<i64: 32, 128>}, {pipeline_mode = #tpu.pipeline_mode<synchronous>, transform_indices = @transform_2, window_bounds = array<i64: 1, 128>}, {pipeline_mode = #tpu.pipeline_mode<synchronous>, transform_indices = @transform_3, window_bounds = array<i64: 128, 128>}, {pipeline_mode = #tpu.pipeline_mode<synchronous>, transform_indices = @transform_4, window_bounds = array<i64: 1, 128>}, {transform_indices = @transform_5, window_bounds = array<i64: 1, 1, 128>}]} {
    %c0_i32 = arith.constant 0 : i32
    %0 = arith.cmpi eq, %arg1, %c0_i32 : i32
    %1 = arith.extui %0 : i1 to i32
    %c0_i32_0 = arith.constant 0 : i32
    %2 = arith.cmpi ne, %1, %c0_i32_0 : i32
    scf.if %2 {
      %cst_15 = arith.constant 0.000000e+00 : f32
      %20 = vector.broadcast %cst_15 : f32 to vector<1x128xf32>
      %c0_16 = arith.constant 0 : index
      %c0_17 = arith.constant 0 : index
      %21 = vector.load %arg8[%c0_16, %c0_17] : memref<1x128xf32, #tpu.memory_space<vmem>>, vector<1x128xf32>
      tpu.vector_store %arg8[%c0_16, %c0_17], %20 {strides = array<i32>} : memref<1x128xf32, #tpu.memory_space<vmem>>, vector<1x128xf32>,
    } else {
    }
    %c0 = arith.constant 0 : index
    %c0_1 = arith.constant 0 : index
    %c0_2 = arith.constant 0 : index
    %3 = vector.load %arg2[%c0, %c0_1, %c0_2] : memref<1x256x32xbf16, #tpu.memory_space<vmem>>, vector<1x256x32xbf16>
    %4 = vector.shape_cast %3 : vector<1x256x32xbf16> to vector<256x32xbf16>
    %c0_3 = arith.constant 0 : index
    %c0_4 = arith.constant 0 : index
    %5 = vector.load %arg3[%c0_3, %c0_4] : memref<32x128xbf16, #tpu.memory_space<vmem>>, vector<32x128xbf16>
    %cst = arith.constant dense<0.000000e+00> : vector<256x128xf32>
    %6 = tpu.matmul %4, %5, %cst {dimension_numbers = #tpu.dot_dimension_numbers<[1], [0], [0], [1], [0, 0, 1, 1], [], []>} : vector<256x32xbf16>, vector<32x128xbf16>, vector<256x128xf32> -> vector<256x128xf32>
    %c0_5 = arith.constant 0 : index
    %c0_6 = arith.constant 0 : index
    %7 = vector.load %arg4[%c0_5, %c0_6] : memref<1x128xf32, #tpu.memory_space<vmem>>, vector<1x128xf32>
    %8 = vector.broadcast %7 : vector<1x128xf32> to vector<256x128xf32>
    %9 = arith.addf %6, %8 : vector<256x128xf32>
    %cst_7 = arith.constant 0.000000e+00 : f32
    %10 = vector.broadcast %cst_7 : f32 to vector<256x128xf32>
    %11 = arith.maximumf %9, %10 : vector<256x128xf32>
    %c0_8 = arith.constant 0 : index
    %c0_9 = arith.constant 0 : index
    %12 = vector.load %arg8[%c0_8, %c0_9] : memref<1x128xf32, #tpu.memory_space<vmem>>, vector<1x128xf32>
    %cst_10 = arith.constant dense<0.000000e+00> : vector<128xf32>
    %13 = vector.multi_reduction <add>, %11, %cst_10 [0] : vector<256x128xf32> to vector<128xf32>
    %14 = vector.shape_cast %13 : vector<128xf32> to vector<1x128xf32>
    %15 = arith.addf %12, %14 : vector<1x128xf32>
    %c0_11 = arith.constant 0 : index
    %c0_12 = arith.constant 0 : index
    %16 = vector.load %arg8[%c0_11, %c0_12] : memref<1x128xf32, #tpu.memory_space<vmem>>, vector<1x128xf32>
    tpu.vector_store %arg8[%c0_11, %c0_12], %15 {strides = array<i32>} : memref<1x128xf32, #tpu.memory_space<vmem>>, vector<1x128xf32>,
    %c0_i32_13 = arith.constant 0 : i32
    %17 = arith.cmpi eq, %arg1, %c0_i32_13 : i32
    %18 = arith.extui %17 : i1 to i32
    %c0_i32_14 = arith.constant 0 : i32
    %19 = arith.cmpi ne, %18, %c0_i32_14 : i32
    scf.if %19 {
      %c0_15 = arith.constant 0 : index
      %c0_16 = arith.constant 0 : index
      %20 = vector.load %arg8[%c0_15, %c0_16] : memref<1x128xf32, #tpu.memory_space<vmem>>, vector<1x128xf32>
      %cst_17 = arith.constant 3.906250e-03 : f32
      %21 = vector.broadcast %cst_17 : f32 to vector<1x128xf32>
      %22 = arith.mulf %20, %21 : vector<1x128xf32>
      %c0_18 = arith.constant 0 : index
      %c0_19 = arith.constant 0 : index
      %23 = vector.load %arg5[%c0_18, %c0_19] : memref<128x128xf32, #tpu.memory_space<vmem>>, vector<128x128xf32>
      %cst_20 = arith.constant dense<0.000000e+00> : vector<1x128xf32>
      %24 = tpu.matmul %22, %23, %cst_20 {dimension_numbers = #tpu.dot_dimension_numbers<[1], [0], [0], [1], [0, 0, 1, 1], [], []>} : vector<1x128xf32>, vector<128x128xf32>, vector<1x128xf32> -> vector<1x128xf32>
      %c0_21 = arith.constant 0 : index
      %c0_22 = arith.constant 0 : index
      %25 = vector.load %arg6[%c0_21, %c0_22] : memref<1x128xf32, #tpu.memory_space<vmem>>, vector<1x128xf32>
      %26 = arith.addf %24, %25 : vector<1x128xf32>
      %c0_23 = arith.constant 0 : index
      %c0_24 = arith.constant 0 : index
      %c0_25 = arith.constant 0 : index
      %27 = vector.load %arg7[%c0_23, %c0_24, %c0_25] : memref<1x1x128xf32, #tpu.memory_space<vmem>>, vector<1x1x128xf32>
      %28 = vector.shape_cast %27 : vector<1x1x128xf32> to vector<1x128xf32>
      %29 = vector.shape_cast %26 : vector<1x128xf32> to vector<1x1x128xf32>
      tpu.vector_store %arg7[%c0_23, %c0_24, %c0_25], %29 {strides = array<i32>} : memref<1x1x128xf32, #tpu.memory_space<vmem>>, vector<1x1x128xf32>,
    } else {
    }
    return
  }
  func.func @transform_0(%arg0: i32, %arg1: i32) -> (i32, i32, i32) {
    %c0_i32 = arith.constant 0 : i32
    %c0_i32_0 = arith.constant 0 : i32
    return %arg0, %arg1, %c0_i32 : i32, i32, i32
  }
  func.func @transform_1(%arg0: i32, %arg1: i32) -> (i32, i32) {
    %c0_i32 = arith.constant 0 : i32
    %c0_i32_0 = arith.constant 0 : i32
    %c0_i32_1 = arith.constant 0 : i32
    return %c0_i32, %c0_i32_0 : i32, i32
  }
  func.func @transform_2(%arg0: i32, %arg1: i32) -> (i32, i32) {
    %c0_i32 = arith.constant 0 : i32
    %c0_i32_0 = arith.constant 0 : i32
    %c0_i32_1 = arith.constant 0 : i32
    return %c0_i32, %c0_i32_0 : i32, i32
  }
  func.func @transform_3(%arg0: i32, %arg1: i32) -> (i32, i32) {
    %c0_i32 = arith.constant 0 : i32
    %c0_i32_0 = arith.constant 0 : i32
    %c0_i32_1 = arith.constant 0 : i32
    return %c0_i32, %c0_i32_0 : i32, i32
  }
  func.func @transform_4(%arg0: i32, %arg1: i32) -> (i32, i32) {
    %c0_i32 = arith.constant 0 : i32
    %c0_i32_0 = arith.constant 0 : i32
    %c0_i32_1 = arith.constant 0 : i32
    return %c0_i32, %c0_i32_0 : i32, i32
  }
  func.func @transform_5(%arg0: i32, %arg1: i32) -> (i32, i32, i32) {
    %c0_i32 = arith.constant 0 : i32
    %c0_i32_0 = arith.constant 0 : i32
    %c0_i32_1 = arith.constant 0 : i32
    return %arg0, %c0_i32, %c0_i32_0 : i32, i32, i32
  }
}

</mosaic_0001>

<bundles_post_ra>
// kernel: sorghum_forward.1
= control target key start
LH: loop header
LB: loop body
LE: loop exit
PB: predicated region body
PF: predicated region fallthrough
CT: control target
= control target key end

     0   :  { %s1081_s18 = smov 0   ;;  %s1083_s19 = smov 0   ;;  %s1249_s0 = inlined_call_operand.vmem [shape: bf16[2,256,32], index: 0, kind: input, shape index: {}]   ;;  %s1250_s1 = inlined_call_operand.vmem [shape: bf16[32,128], index: 1, kind: input, shape index: {}]   ;;  %s1251_s2 = inlined_call_operand.vmem [shape: f32[1,128], index: 2, kind: input, shape index: {}]   ;;  %s1252_s3 = inlined_call_operand.vmem [shape: f32[128,128], index: 3, kind: input, shape index: {}]   ;;  %s1253_s4 = inlined_call_operand.vmem [shape: f32[1,128], index: 4, kind: input, shape index: {}]   ;;  %s1254_s5 = inlined_call_operand.vmem [shape: f32[2,1,128], index: 5, kind: output, shape index: {}]  }
   0x1   :  { %s1085_s20 = smov 0  }
   0x2 LB: > { %s27_s21 = sadd.s32 1, %s1043_s19  ;;  %p830_p0 = scmp.ge.s32.totalorder %s1047_s20, 1  ;;  %s1047_s20 = sphi %s1085_s20, %s15_s20   ;;  %s1043_s19 = sphi %s1083_s19, %s1256_s19   ;;  %s1039_s18 = sphi %s1081_s18, %s1255_s18  }
   0x3   : > { %p29_p1 = scmp.ge.s32.totalorder %s27_s21, 2  ;;  %p206_p2 = scmp.lt.s32.totalorder %s1047_s20, 3 }
   0x5   : > { %s1258_s21 = smov (%p29_p1, %s27_s21), 0  ;;  %p207_p3 = pnand %p830_p0, %p206_p2 }
   0x6   : > { %p237_p4 = scmp.lt.s32.totalorder (!%p207_p3), %s1039_s18, 1 }
   0x7   : > { %210 = sbr.rel (%p207_p3) target bundleno = 506 (0x1fa), region = 40 }
   0xc   : > { %v1007_v0 = vld [vmem:[%s1250_s1 + $0x8] sm:$0xff]   ;;  %v1008_v1 = vld [vmem:[%s1250_s1] sm:$0xff]   ;;  %s1260_s18 = smov (!%p237_p4, %s1039_s18), 1  ;;  %vm390_vm0 = vcmask 261120   ;;  %v1049_v18 = vmov 0.0   ;;  %v692_v19 = vld [vmem:[%s1252_s3 + $0x78] sm:$0xff] }
   0xd   : > { %906 = vmatprep.subr.bf16.mxu0 %v1007_v0  ;;  %977 = vmatprep.subr.bf16.mxu1 %v1007_v0  ;;  %s870_s26 = sshll.u32 %s1260_s18, 7  ;;  %254 = vst [vmem:[#allocation2] sm:$0x1] %v1049_v18  ;;  %v691_v20 = vld [vmem:[%s1252_s3 + $0x70] sm:$0xff]  ;;  %v690_v21 = vld [vmem:[%s1252_s3 + $0x68] sm:$0xff]  ;;  %v689_v22 = vld [vmem:[%s1252_s3 + $0x60] sm:$0xff] }
   0xe   : > { %907 = vmatpush3.bf16.msra.mxu0 %v1007_v0  ;;  %979 = vmatpush3.bf16.msra.mxu1 %v1007_v0  ;;  %s1111_s29 = scalar_lea.vmem %s1249_s0, %s870_s26  ;;  %v688_v23 = vld [vmem:[%s1252_s3 + $0x58] sm:$0xff]  ;;  %v687_v24 = vld [vmem:[%s1252_s3 + $0x50] sm:$0xff]  ;;  %v686_v25 = vld [vmem:[%s1252_s3 + $0x48] sm:$0xff]  ;;  %vm1050_vm1 = vmmov 0   ;;  %s248_s26 = scalar_lea.vmem %s1254_s5, %s1260_s18 }
   0xf   : > { %908 = vmatprep.subr.bf16.mxu0 %v1008_v1  ;;  %978 = vmatprep.subr.bf16.mxu1 %v1008_v1  ;;  %v1009_v2 = vld [vmem:[%s1111_s29] sm:$0xff]   ;;  %v1010_v3 = vld [vmem:[%s1111_s29 + $0x8] sm:$0xff]   ;;  %v1011_v4 = vld [vmem:[%s1111_s29 + $0x10] sm:$0xff]  }
  0x10   : > { %910 = vmatprep.mubr.msk.bf16.mxu0 %vm390_vm0, %v1009_v2  ;;  %v1012_v5 = vld [vmem:[%s1111_s29 + $0x18] sm:$0xff]   ;;  %v1013_v6 = vld [vmem:[%s1111_s29 + $0x20] sm:$0xff]   ;;  %v1018_v8 = vld [vmem:[%s1111_s29 + $0x48] sm:$0xff]  }
  0x11   : > { %v1017_v7 = vld [vmem:[%s1111_s29 + $0x40] sm:$0xff]   ;;  %v1019_v9 = vld [vmem:[%s1111_s29 + $0x50] sm:$0xff]   ;;  %v1020_v10 = vld [vmem:[%s1111_s29 + $0x58] sm:$0xff]  }
  0x12   : > { %909 = vmatpush3.bf16.msra.mxu0 %v1008_v1  ;;  %980 = vmatpush3.bf16.msra.mxu1 %v1008_v1  ;;  %v1014_v11 = vld [vmem:[%s1111_s29 + $0x28] sm:$0xff]   ;;  %v1021_v12 = vld [vmem:[%s1111_s29 + $0x60] sm:$0xff]   ;;  %v1015_v13 = vld [vmem:[%s1111_s29 + $0x30] sm:$0xff]  }
  0x13   : > { %926 = vmatprep.mubr.msk.bf16.mxu1 %vm390_vm0, %v1017_v7  ;;  %v1022_v14 = vld [vmem:[%s1111_s29 + $0x68] sm:$0xff]   ;;  %v1016_v15 = vld [vmem:[%s1111_s29 + $0x38] sm:$0xff]   ;;  %v1023_v16 = vld [vmem:[%s1111_s29 + $0x70] sm:$0xff]   ;;  %942 = vmatprep.subr.mxu1 %v1049_v18 }
  0x14   : > { %v1024_v17 = vld [vmem:[%s1111_s29 + $0x78] sm:$0xff]   ;;  %v685_v26 = vld [vmem:[%s1252_s3 + $0x40] sm:$0xff]  ;;  %v683_v28 = vld [vmem:[%s1252_s3 + $0x30] sm:$0xff] }
  0x15   : > { %911 = vmatmul.mubr.msk.bf16.vlgmr.msra.gmra.mxu0 %vm390_vm0, %v1010_v3  ;;  %927 = vmatmul.mubr.msk.bf16.vlgmr.msra.gmra.mxu1 %vm390_vm0, %v1018_v8  ;;  %v684_v27 = vld [vmem:[%s1252_s3 + $0x38] sm:$0xff]  ;;  %v682_v29 = vld [vmem:[%s1252_s3 + $0x28] sm:$0xff]  ;;  %v681_v30 = vld [vmem:[%s1252_s3 + $0x20] sm:$0xff] }
  0x16   : > { %914 = vmatprep.mubr.msk.bf16.mxu0 %vm390_vm0, %v1011_v4  ;;  %930 = vmatprep.mubr.msk.bf16.mxu1 %vm390_vm0, %v1019_v9  ;;  %v680_v31 = vld [vmem:[%s1252_s3 + $0x18] sm:$0xff]  ;;  %v679_v32 = vld [vmem:[%s1252_s3 + $0x10] sm:$0xff]  ;;  %v678_v33 = vld [vmem:[%s1252_s3 + $0x8] sm:$0xff] }
  0x17   : > { %943 = vmatpush3.msra.mxu1 %v692_v19  ;;  %v677_v34 = vld [vmem:[%s1252_s3] sm:$0xff] }
  0x18   : > { %944 = vmatprep.subr.mxu1 %v1049_v18  ;;  %v1196_v37 = vld [vmem:[%s1251_s2] ss:$0 sm:$0xff] }
  0x19   : > { %945 = vmatpush3.msra.mxu1 %v691_v20 }
  0x1a   : > { %946 = vmatprep.subr.mxu1 %v1049_v18 }
  0x1b   : > { %947 = vmatpush3.msra.mxu1 %v690_v21 }
  0x1c   : > { %948 = vmatprep.subr.mxu1 %v1049_v18 }
  0x1d   : > { %915 = vmatmul.mubr.msk.bf16.gmra.mxu0 %vm390_vm0, %v1012_v5  ;;  %931 = vmatmul.mubr.msk.bf16.gmra.mxu1 %vm390_vm0, %v1020_v10 }
  0x1e   : > { %918 = vmatprep.mubr.msk.bf16.mxu0 %vm390_vm0, %v1013_v6  ;;  %934 = vmatprep.mubr.msk.bf16.mxu1 %vm390_vm0, %v1021_v12 }
  0x1f   : > { %949 = vmatpush3.msra.mxu1 %v689_v22 }
  0x20   : > { %950 = vmatprep.subr.mxu1 %v1049_v18 }
  0x21   : > { %951 = vmatpush3.msra.mxu1 %v688_v23 }
  0x22   : > { %952 = vmatprep.subr.mxu1 %v1049_v18 }
  0x23   : > { %953 = vmatpush3.msra.mxu1 %v687_v24 }
  0x24   : > { %954 = vmatprep.subr.mxu1 %v1049_v18 }
  0x25   : > { %919 = vmatmul.mubr.msk.bf16.gmra.mxu0 %vm390_vm0, %v1014_v11  ;;  %935 = vmatmul.mubr.msk.bf16.gmra.mxu1 %vm390_vm0, %v1022_v14 }
  0x26   : > { %922 = vmatprep.mubr.msk.bf16.mxu0 %vm390_vm0, %v1015_v13  ;;  %938 = vmatprep.mubr.msk.bf16.mxu1 %vm390_vm0, %v1023_v16 }
  0x27   : > { %955 = vmatpush3.msra.mxu1 %v686_v25 }
  0x28   : > { %956 = vmatprep.subr.mxu1 %v1049_v18 }
  0x29   : > { %957 = vmatpush3.msra.mxu1 %v685_v26 }
  0x2a   : > { %958 = vmatprep.subr.mxu1 %v1049_v18 }
  0x2b   : > { %959 = vmatpush3.msra.mxu1 %v684_v27 }
  0x2c   : > { %960 = vmatprep.subr.mxu1 %v1049_v18 }
  0x2d   : > { %923 = vmatmul.mubr.msk.bf16.gmra.mxu0 %vm390_vm0, %v1016_v15  ;;  %939 = vmatmul.mubr.msk.bf16.gmra.mxu1 %vm390_vm0, %v1024_v17 }
  0x2e   : > { %961 = vmatpush3.msra.mxu1 %v683_v28  ;;  %974 = vmatprep.mubr.msk.f32.mxu1 %vm1050_vm1, %v1049_v18 }
  0x2f   : > { %962 = vmatprep.subr.mxu1 %v1049_v18 }
  0x30   : > { %963 = vmatpush3.msra.mxu1 %v682_v29 }
  0x31   : > { %964 = vmatprep.subr.mxu1 %v1049_v18 }
  0x32   : > { %965 = vmatpush3.msra.mxu1 %v681_v30 }
  0x33   : > { %966 = vmatprep.subr.mxu1 %v1049_v18 }
  0x34   : > { %967 = vmatpush3.msra.mxu1 %v680_v31 }
  0x35   : > { %968 = vmatprep.subr.mxu1 %v1049_v18 }
  0x36   : > { %969 = vmatpush3.msra.mxu1 %v679_v32 }
  0x37   : > { %970 = vmatprep.subr.mxu1 %v1049_v18 }
  0x38   : > { %971 = vmatpush3.msra.mxu1 %v678_v33 }
  0x39   : > { %972 = vmatprep.subr.mxu1 %v1049_v18 }
  0x3a   : > { %973 = vmatpush3.msra.mxu1 %v677_v34 }
  0xd5   : > { %v912_v35 = vpop.f32.mrf.mxu0  ;;  %v1201_v43 = vpop.f32.mrf.mxu1 }
  0xd6   : > { %v482_v41 = vadd.f32 %v912_v35, %v1196_v37 }
  0xd7   : > { %v473_v36 = vpop.f32.mrf.mxu0  ;;  %v537_v48 = vpop.f32.mrf.mxu1 }
  0xd8   : > { %v474_v39 = vadd.f32 %v1196_v37, %v473_v36  ;;  %v602_v50 = vmax.f32 %v482_v41, 0.0 }
  0xd9   : > { %v913_v38 = vpop.f32.mrf.mxu0  ;;  %v929_v53 = vpop.f32.mrf.mxu1 }
  0xda   : > { %v600_v45 = vmax.f32 %v474_v39, 0.0  ;;  %v485_v46 = vadd.f32 %v913_v38, %v1196_v37 }
  0xdb   : > { %v476_v40 = vpop.f32.mrf.mxu0  ;;  %v540_v57 = vpop.f32.mrf.mxu1 }
  0xdc   : > { %v477_v42 = vadd.f32 %v1196_v37, %v476_v40  ;;  %v603_v55 = vmax.f32 %v485_v46, 0.0 }
  0xdd   : > { %v916_v44 = vpop.f32.mrf.mxu0  ;;  %v932_v63 = vpop.f32.mrf.mxu1 }
  0xde   : > { %v601_v47 = vmax.f32 %v477_v42, 0.0  ;;  %v498_v59 = vadd.f32 %v916_v44, %v1196_v37  ;;  %v538_v42 = vadd.f32 %v1196_v37, %v537_v48 }
  0xdf   : > { %v489_v49 = vpop.f32.mrf.mxu0  ;;  %v553_v5 = vpop.f32.mrf.mxu1 }
  0xe0   : > { %v633_v51 = vadd.f32 %v601_v47, %v600_v45  ;;  %v490_v52 = vadd.f32 %v1196_v37, %v489_v49  ;;  %v606_v6 = vmax.f32 %v498_v59, 0.0  ;;  %v541_v47 = vadd.f32 %v1196_v37, %v540_v57 }
  0xe1   : > { %v917_v54 = vpop.f32.mrf.mxu0  ;;  %v933_v13 = vpop.f32.mrf.mxu1  ;;  %v554_v48 = vadd.f32 %v1196_v37, %v553_v5 }
  0xe2   : > { %v634_v56 = vadd.f32 %v633_v51, %v602_v50  ;;  %v604_v60 = vmax.f32 %v490_v52, 0.0  ;;  %v501_v2 = vadd.f32 %v917_v54, %v1196_v37  ;;  %v546_v50 = vadd.f32 %v1201_v43, %v1196_v37 }
  0xe3   : > { %v492_v58 = vpop.f32.mrf.mxu0  ;;  %v556_v23 = vpop.f32.mrf.mxu1  ;;  %v616_v51 = vmax.f32 %v538_v42, 0.0  ;;  %v549_v54 = vadd.f32 %v929_v53, %v1196_v37  ;;  %v632_v42 = vld [vmem:[#allocation2] sm:$0x1] }
  0xe4   : > { %v635_v61 = vadd.f32 %v634_v56, %v603_v55  ;;  %v493_v62 = vadd.f32 %v1196_v37, %v492_v58  ;;  %v607_v10 = vmax.f32 %v501_v2, 0.0  ;;  %v617_v55 = vmax.f32 %v541_v47, 0.0 }
  0xe5   : > { %v920_v0 = vpop.f32.mrf.mxu0  ;;  %v936_v31 = vpop.f32.mrf.mxu1  ;;  %v618_v59 = vmax.f32 %v546_v50, 0.0  ;;  %v620_v2 = vmax.f32 %v554_v48, 0.0 }
  0xe6   : > { %v636_v1 = vadd.f32 %v635_v61, %v604_v60  ;;  %v605_v3 = vmax.f32 %v493_v62, 0.0  ;;  %v514_v14 = vadd.f32 %v920_v0, %v1196_v37  ;;  %v619_v61 = vmax.f32 %v549_v54, 0.0 }
  0xe7   : > { %v505_v4 = vpop.f32.mrf.mxu0  ;;  %v569_v40 = vpop.f32.mrf.mxu1  ;;  %v557_v0 = vadd.f32 %v1196_v37, %v556_v23 }
  0xe8   : > { %v637_v7 = vadd.f32 %v636_v1, %v605_v3  ;;  %v506_v8 = vadd.f32 %v1196_v37, %v505_v4  ;;  %v610_v24 = vmax.f32 %v514_v14, 0.0  ;;  %v562_v1 = vadd.f32 %v932_v63, %v1196_v37 }
  0xe9   : > { %v921_v9 = vpop.f32.mrf.mxu0  ;;  %v937_v49 = vpop.f32.mrf.mxu1  ;;  %v565_v4 = vadd.f32 %v933_v13, %v1196_v37  ;;  %v621_v53 = vmax.f32 %v557_v0, 0.0  ;;  %v578_v14 = vadd.f32 %v936_v31, %v1196_v37 }
  0xea   : > { %v638_v11 = vadd.f32 %v637_v7, %v606_v6  ;;  %v608_v15 = vmax.f32 %v506_v8, 0.0  ;;  %v517_v20 = vadd.f32 %v921_v9, %v1196_v37  ;;  %v622_v7 = vmax.f32 %v562_v1, 0.0 }
  0xeb   : > { %v508_v12 = vpop.f32.mrf.mxu0  ;;  %v572_v58 = vpop.f32.mrf.mxu1  ;;  %v570_v9 = vadd.f32 %v1196_v37, %v569_v40 }
  0xec   : > { %v639_v16 = vadd.f32 %v638_v11, %v607_v10  ;;  %v509_v17 = vadd.f32 %v1196_v37, %v508_v12  ;;  %v611_v28 = vmax.f32 %v517_v20, 0.0  ;;  %v623_v10 = vmax.f32 %v565_v4, 0.0 }
  0xed   : > { %v924_v18 = vpop.f32.mrf.mxu0  ;;  %v940_v57 = vpop.f32.mrf.mxu1  ;;  %v573_v11 = vadd.f32 %v1196_v37, %v572_v58 }
  0xee   : > { %v640_v19 = vadd.f32 %v639_v16, %v608_v15  ;;  %v609_v21 = vmax.f32 %v509_v17, 0.0  ;;  %v530_v32 = vadd.f32 %v924_v18, %v1196_v37  ;;  %v624_v15 = vmax.f32 %v570_v9, 0.0 }
  0xef   : > { %v521_v22 = vpop.f32.mrf.mxu0  ;;  %v585_v6 = vpop.f32.mrf.mxu1  ;;  %v581_v17 = vadd.f32 %v937_v49, %v1196_v37  ;;  %v625_v18 = vmax.f32 %v573_v11, 0.0 }
  0xf0   : > { %v641_v25 = vadd.f32 %v640_v19, %v609_v21  ;;  %v522_v26 = vadd.f32 %v1196_v37, %v521_v22  ;;  %v614_v41 = vmax.f32 %v530_v32, 0.0  ;;  %v626_v19 = vmax.f32 %v578_v14, 0.0 }
  0xf1   : > { %v925_v27 = vpop.f32.mrf.mxu0  ;;  %v941_v12 = vpop.f32.mrf.mxu1  ;;  %v586_v21 = vadd.f32 %v1196_v37, %v585_v6  ;;  %v627_v22 = vmax.f32 %v581_v17, 0.0 }
  0xf2   : > { %v642_v29 = vadd.f32 %v641_v25, %v610_v24  ;;  %v612_v33 = vmax.f32 %v522_v26, 0.0  ;;  %v533_v38 = vadd.f32 %v925_v27, %v1196_v37  ;;  %v594_v25 = vadd.f32 %v940_v57, %v1196_v37 }
  0xf3   : > { %v524_v30 = vpop.f32.mrf.mxu0  ;;  %v588_v13 = vpop.f32.mrf.mxu1  ;;  %v628_v26 = vmax.f32 %v586_v21, 0.0 }
  0xf4   : > { %v643_v34 = vadd.f32 %v642_v29, %v611_v28  ;;  %v525_v35 = vadd.f32 %v1196_v37, %v524_v30  ;;  %v615_v45 = vmax.f32 %v533_v38, 0.0  ;;  %v589_v24 = vadd.f32 %v1196_v37, %v588_v13 }
  0xf5   : > { %v597_v29 = vadd.f32 %v941_v12, %v1196_v37  ;;  %v630_v31 = vmax.f32 %v594_v25, 0.0  ;;  %v693_v37 = vld [vmem:[%s1253_s4] sm:$0x1] }
  0xf6   : > { %v644_v36 = vadd.f32 %v643_v34, %v612_v33  ;;  %v613_v39 = vmax.f32 %v525_v35, 0.0  ;;  %v629_v30 = vmax.f32 %v589_v24, 0.0 }
  0xf7   : > { %v631_v33 = vmax.f32 %v597_v29, 0.0 }
  0xf8   : > { %v645_v44 = vadd.f32 %v644_v36, %v613_v39 }
  0xfa   : > { %v646_v46 = vadd.f32 %v645_v44, %v614_v41 }
  0xfc   : > { %v647_v52 = vadd.f32 %v646_v46, %v615_v45 }
  0xfe   : > { %v648_v56 = vadd.f32 %v647_v52, %v616_v51 }
 0x100   : > { %v649_v60 = vadd.f32 %v648_v56, %v617_v55 }
 0x102   : > { %v650_v62 = vadd.f32 %v649_v60, %v618_v59 }
 0x104   : > { %v651_v43 = vadd.f32 %v650_v62, %v619_v61 }
 0x106   : > { %v652_v3 = vadd.f32 %v651_v43, %v620_v2 }
 0x108   : > { %v653_v8 = vadd.f32 %v652_v3, %v621_v53 }
 0x10a   : > { %v654_v5 = vadd.f32 %v653_v8, %v622_v7 }
 0x10c   : > { %v655_v63 = vadd.f32 %v654_v5, %v623_v10 }
 0x10e   : > { %v656_v16 = vadd.f32 %v655_v63, %v624_v15 }
 0x110   : > { %v657_v20 = vadd.f32 %v656_v16, %v625_v18 }
 0x112   : > { %v658_v23 = vadd.f32 %v657_v20, %v626_v19 }
 0x114   : > { %v659_v27 = vadd.f32 %v658_v23, %v627_v22 }
 0x116   : > { %v660_v28 = vadd.f32 %v659_v27, %v628_v26 }
 0x118   : > { %v661_v32 = vadd.f32 %v660_v28, %v629_v30 }
 0x11a   : > { %v662_v34 = vadd.f32 %v661_v32, %v630_v31 }
 0x11c   : > { %v663_v35 = vadd.f32 %v662_v34, %v631_v33 }
 0x11e   : > { %v664_v36 = vrot.slane %v663_v35, 4 }
 0x120   : > { %v665_v38 = vadd.f32 %v664_v36, %v663_v35 }
 0x122   : > { %v666_v39 = vrot.slane %v665_v38, 2 }
 0x124   : > { %v667_v40 = vadd.f32 %v666_v39, %v665_v38 }
 0x126   : > { %v668_v41 = vrot.slane %v667_v40, 1 }
 0x128   : > { %v669_v44 = vadd.f32 %v668_v41, %v667_v40 }
 0x12a   : > { %v670_v45 = vadd.f32 %v669_v44, %v632_v42 }
 0x12c   : > { %671 = vst [vmem:[#allocation2] sm:$0x1] %v670_v45 }
 0x133   : > { %v675_v46 = vld [vmem:[#allocation2] sm:$0x1] }
 0x134   : > { %v676_v47 = vmul.f32 0.00390625, %v675_v46 }
 0x136   : > { %975 = vmatmul.mubr.f32.vlgmr.msra.gmra.mxu1 %v676_v47 }
 0x1f6   : > { %v760_v49 = vpop.f32.mrf.mxu1 }
 0x1f7   : > { %v761_v50 = vadd.f32 %v760_v49, %v693_v37 }
 0x1f8   : > { %v976_v51 = vpop.f32.mrf.mxu1 }
 0x1f9   : > { %764 = vst [vmem:[%s248_s26] sm:$0x1] %v761_v50 }
 0x1fa PF: > { %s15_s20 = sadd.s32 1, %s1047_s20   ;;  %s1255_s18 = smov %s1043_s19 }
 0x1fb   : > { %p12_p5 = scmp.ge.s32.totalorder %s15_s20, 4   ;;  %s1256_s19 = smov %s1258_s21 }
 0x1fd   :  { %14 = sbr.rel (!%p12_p5) target bundleno = 2 (0x2), region = 78 }

</bundles_post_ra>
